<compile_context>
chip_gen: v6e
topology: v6e:2x2x1
jax: 0.10.0
libtpu: 0.0.40
codegen_flags: <defaults>
</compile_context>

<pallas_src>
import functools
import math

import jax
import jax.numpy as jnp
from jax.experimental import pallas as pl
from jax.experimental.pallas import tpu as pltpu


# ----------------------------- helpers ------------------------------------ #

def _pick_tile(total, target, multiple):
    """Largest tile t <= target with total % t == 0 and t % multiple == 0;
    falls back to the full extent (always a legal block dim)."""
    if total <= target:
        return total
    t = (target // multiple) * multiple
    while t >= multiple:
        if total % t == 0:
            return t
        t -= multiple
    return total


def _compiler_params(dims, est_bytes):
    # VMEM budget guard: raise the scoped limit when resident weights +
    # double-buffered activation blocks need it, staying well under v7x's
    # 64 MiB physical VMEM.
    limit = int(min(56 * 2**20, max(32 * 2**20, (est_bytes * 3) // 2)))
    return pltpu.CompilerParams(dimension_semantics=dims, vmem_limit_bytes=limit)


# ----------------------------- Pallas kernels ----------------------------- #

def _qkv_proj_kernel(x_ref, w_ref, b_ref, qkv_ref):
    # x: [TM, H] f32; w: [H, 3H] compute dtype (Q cols pre-scaled by 1/sqrt(D));
    # b: [1, 3H] f32 -> qkv: [TM, 3H].
    x = x_ref[...].astype(w_ref.dtype)
    y = jnp.dot(x, w_ref[...], preferred_element_type=jnp.float32) + b_ref[...]
    qkv_ref[...] = y.astype(qkv_ref.dtype)


def _flash_attn_kernel(seqlen_ref, q_ref, k_ref, v_ref, mask_ref, o_ref,
                       m_sc, l_sc, acc_sc, *, tk, approx_recip):
    # blocks: q [1,1,TQ,D], k/v [1,1,TK,D], mask [1,1,1,TK] (additive), o [1,1,TQ,D].
    # scratch: m/l [TQ,1], acc [TQ,D] (f32). Grid = (B, nH, S//TQ, S//TK),
    # KV axis last ("arbitrary") -> online softmax, lane-dense blocks, no head unroll.
    b = pl.program_id(0)
    kv_i = pl.program_id(3)

    @pl.when(kv_i == 0)
    def _init():
        m_sc[...] = jnp.full(m_sc.shape, -jnp.inf, dtype=m_sc.dtype)
        l_sc[...] = jnp.zeros(l_sc.shape, dtype=l_sc.dtype)
        acc_sc[...] = jnp.zeros(acc_sc.shape, dtype=acc_sc.dtype)

    # Skip fully padded KV tiles (padding is handled by the additive mask anyway;
    # tile 0 always runs so the softmax denominator stays > 0).
    @pl.when((kv_i == 0) | (kv_i * tk < seqlen_ref[b]))
    def _compute():
        q = q_ref[0, 0]                                          # [TQ, D]
        k = k_ref[0, 0]                                          # [TK, D]
        v = v_ref[0, 0]                                          # [TK, D]
        # scores = q k^T (1/sqrt(D) already folded into Wq); contract last dims.
        s = jax.lax.dot_general(q, k, (((1,), (1,)), ((), ())),
                                preferred_element_type=jnp.float32)
        s = s + mask_ref[0, 0]                                   # [1, TK] broadcast

        m_prev = m_sc[...]                                       # [TQ, 1]
        m_new = jnp.maximum(m_prev, jnp.max(s, axis=-1, keepdims=True))
        alpha = jnp.exp(m_prev - m_new)
        p = jnp.exp(s - m_new)                                   # f32 [TQ, TK]
        l_sc[...] = alpha * l_sc[...] + jnp.sum(p, axis=-1, keepdims=True)
        acc_sc[...] = alpha * acc_sc[...] + jnp.dot(
            p.astype(v.dtype), v, preferred_element_type=jnp.float32)
        m_sc[...] = m_new

    @pl.when(kv_i == pl.num_programs(3) - 1)
    def _finalize():
        l = l_sc[...]
        inv_l = pl.reciprocal(l, approx=True) if approx_recip else 1.0 / l
        o_ref[0, 0] = (acc_sc[...] * inv_l).astype(o_ref.dtype)


def _out_proj_residual_ln_kernel(ctx_ref, w_ref, b_ref, resid_ref,
                                 gamma_ref, beta_ref, o_ref, *, eps):
    # ctx: [TM, H] compute dtype; w: [H, H]; b/gamma/beta: [1, H] f32; resid: [TM, H] f32.
    attn = jnp.dot(ctx_ref[...].astype(w_ref.dtype), w_ref[...],
                   preferred_element_type=jnp.float32)
    # dropout(attn + bias) is identity (eval mode); residual add + LayerNorm in f32.
    h = attn + b_ref[...] + resid_ref[...]
    mean = jnp.mean(h, axis=-1, keepdims=True)
    c = h - mean
    var = jnp.mean(c * c, axis=-1, keepdims=True)
    inv = jax.lax.rsqrt(var + eps)
    o_ref[...] = (c * inv * gamma_ref[...] + beta_ref[...]).astype(o_ref.dtype)


# ------------------------------- Wrapper ----------------------------------- #

def bert_attention_tp(hidden_states, attention_mask, params, *,
                      num_heads, layer_norm_eps=1e-12,
                      compute_dtype=jnp.bfloat16):
    B, S, H = hidden_states.shape
    assert H % num_heads == 0
    D = H // num_heads
    M = B * S
    f32 = jnp.float32
    wbytes = jnp.dtype(compute_dtype).itemsize
    is_bf16 = jnp.dtype(compute_dtype) == jnp.dtype(jnp.bfloat16)

    x2d = hidden_states.reshape(M, H)                     # free row-major view

    # Weight/bias prep (tiny, one-time). Fold 1/sqrt(D) into the Q columns of the
    # fused QKV weight/bias so the attention kernel never scales the score tile.
    scale = 1.0 / math.sqrt(D)
    col_scale = jnp.concatenate([jnp.full((H,), scale, f32),
                                 jnp.ones((2 * H,), f32)])
    w_qkv = (params["w_qkv"].astype(f32) * col_scale[None, :]).astype(compute_dtype)
    b_qkv = (params["b_qkv"].astype(f32) * col_scale)[None, :]
    w_out = params["w_out"].astype(compute_dtype)
    b_out = params["b_out"][None, :].astype(f32)
    gamma = params["ln_gamma"][None, :].astype(f32)
    beta = params["ln_beta"][None, :].astype(f32)
    mask = attention_mask.astype(f32)                     # [B, 1, 1, S] additive

    # Per-batch valid length from the additive padding mask (0 = attend), used to
    # skip fully padded KV tiles via scalar prefetch. Robust to any valid/pad split.
    valid = mask[:, 0, 0, :] > -0.5
    last = S - jnp.argmax(valid[:, ::-1].astype(jnp.int32), axis=-1)
    seq_lens = jnp.where(jnp.any(valid, axis=-1), last, 0).astype(jnp.int32)

    # Tile sizes (fall back to full extents at tiny shapes). bf16 packs 16 rows
    # per sublane tile -> 16-multiples for row tiles on the bf16 path.
    row_mult = 16 if is_bf16 else 8
    TM = _pick_tile(M, 512, row_mult)    # projection rows per step
    TQ = _pick_tile(S, 512, row_mult)    # query rows per attention step
    TK = _pick_tile(S, 256, 128)         # kv rows per attention step

    # 1) Fused QKV projection: one [TM,H] x [H,3H] GEMM per row tile; weights and
    #    bias are single-buffered residents; activation tiles double-buffered.
    qkv_est = (H * 3 * H * wbytes + 3 * H * 4
               + 2 * TM * H * 4 + 2 * TM * 3 * H * wbytes)
    qkv = pl.pallas_call(
        _qkv_proj_kernel,
        out_shape=jax.ShapeDtypeStruct((M, 3 * H), compute_dtype),
        grid=(M // TM,),
        in_specs=[
            pl.BlockSpec((TM, H), lambda i: (i, 0)),
            pl.BlockSpec((H, 3 * H), lambda i: (0, 0),
                         pipeline_mode=pl.Buffered(1)),
            pl.BlockSpec((1, 3 * H), lambda i: (0, 0),
                         pipeline_mode=pl.Buffered(1)),
        ],
        out_specs=pl.BlockSpec((TM, 3 * H), lambda i: (i, 0)),
        compiler_params=_compiler_params(("parallel",), qkv_est),
    )(x2d, w_qkv, b_qkv)

    # 2) Flash attention on head-major [B, nH, S, D] tensors (wrapper-level layout
    #    plumbing); grid carries the head axis -> lane-dense (TQ,D)/(TK,D) blocks.
    qkv5 = qkv.reshape(B, S, 3, num_heads, D)
    q4 = jnp.transpose(qkv5[:, :, 0], (0, 2, 1, 3))       # [B, nH, S, D]
    k4 = jnp.transpose(qkv5[:, :, 1], (0, 2, 1, 3))
    v4 = jnp.transpose(qkv5[:, :, 2], (0, 2, 1, 3))

    attn_est = (2 * TQ * D * wbytes + 4 * TK * D * wbytes + 2 * TK * 4
                + TQ * (D + 2) * 4 + 2 * TQ * D * wbytes + TQ * TK * 4)
    ctx = pl.pallas_call(
        functools.partial(_flash_attn_kernel, tk=TK,
                          approx_recip=is_bf16),
        out_shape=jax.ShapeDtypeStruct((B, num_heads, S, D), compute_dtype),
        grid_spec=pltpu.PrefetchScalarGridSpec(
            num_scalar_prefetch=1,
            grid=(B, num_heads, S // TQ, S // TK),
            in_specs=[
                pl.BlockSpec((1, 1, TQ, D), lambda b, h, qi, ki, sl: (b, h, qi, 0)),
                pl.BlockSpec((1, 1, TK, D), lambda b, h, qi, ki, sl: (b, h, ki, 0)),
                pl.BlockSpec((1, 1, TK, D), lambda b, h, qi, ki, sl: (b, h, ki, 0)),
                pl.BlockSpec((1, 1, 1, TK), lambda b, h, qi, ki, sl: (b, 0, 0, ki)),
            ],
            out_specs=pl.BlockSpec((1, 1, TQ, D),
                                   lambda b, h, qi, ki, sl: (b, h, qi, 0)),
            scratch_shapes=[
                pltpu.VMEM((TQ, 1), jnp.float32),   # running max
                pltpu.VMEM((TQ, 1), jnp.float32),   # running denominator
                pltpu.VMEM((TQ, D), jnp.float32),   # output accumulator
            ]),
        compiler_params=_compiler_params(
            ("parallel", "parallel", "parallel", "arbitrary"), attn_est),
    )(seq_lens, q4, k4, v4, mask)

    # 3) Output projection + bias + residual + LayerNorm, row-tiled with
    #    single-buffered resident weights.
    ctx2d = jnp.transpose(ctx, (0, 2, 1, 3)).reshape(M, H)
    out_est = (H * H * wbytes + 3 * H * 4
               + 2 * TM * H * wbytes + 4 * TM * H * 4)
    out = pl.pallas_call(
        functools.partial(_out_proj_residual_ln_kernel, eps=layer_norm_eps),
        out_shape=jax.ShapeDtypeStruct((M, H), jnp.float32),
        grid=(M // TM,),
        in_specs=[
            pl.BlockSpec((TM, H), lambda i: (i, 0)),
            pl.BlockSpec((H, H), lambda i: (0, 0), pipeline_mode=pl.Buffered(1)),
            pl.BlockSpec((1, H), lambda i: (0, 0), pipeline_mode=pl.Buffered(1)),
            pl.BlockSpec((TM, H), lambda i: (i, 0)),
            pl.BlockSpec((1, H), lambda i: (0, 0), pipeline_mode=pl.Buffered(1)),
            pl.BlockSpec((1, H), lambda i: (0, 0), pipeline_mode=pl.Buffered(1)),
        ],
        out_specs=pl.BlockSpec((TM, H), lambda i: (i, 0)),
        compiler_params=_compiler_params(("parallel",), out_est),
    )(ctx2d, w_out, b_out, x2d, gamma, beta)

    return out.reshape(B, S, H)


# ----------------------------- Pure-JAX reference -------------------------- #

def _reference(hidden_states, attention_mask, params, *, num_heads, eps):
    B, S, H = hidden_states.shape
    D = H // num_heads
    x = hidden_states.reshape(B * S, H)
    qkv = x @ params["w_qkv"] + params["b_qkv"]
    q, k, v = [qkv[:, i * H:(i + 1) * H].reshape(B, S, num_heads, D)
               .transpose(0, 2, 1, 3) for i in range(3)]
    s = jnp.einsum("bhqd,bhkd->bhqk", q, k) / math.sqrt(D) + attention_mask
    p = jax.nn.softmax(s, axis=-1)
    ctx = jnp.einsum("bhqk,bhkd->bhqd", p, v).transpose(0, 2, 1, 3).reshape(B * S, H)
    h = ctx @ params["w_out"] + params["b_out"] + x
    mu = h.mean(-1, keepdims=True)
    var = ((h - mu) ** 2).mean(-1, keepdims=True)
    y = (h - mu) / jnp.sqrt(var + eps) * params["ln_gamma"] + params["ln_beta"]
    return y.reshape(B, S, H)


# ---------------------------------- Main ------------------------------------ #

if __name__ == "__main__":
    B, S, H, NUM_HEADS = 2, 8, 32, 4
    EPS = 1e-12
    STD = 0.02

    key = jax.random.PRNGKey(0)
    keys = jax.random.split(key, 8)

    hidden = jax.random.normal(keys[0], (B, S, H), dtype=jnp.float32)

    # padding mask: batch 0 fully valid, batch 1 has its last 3 tokens padded
    valid = jnp.array([[1.0] * S, [1.0] * (S - 3) + [0.0] * 3], dtype=jnp.float32)
    attn_mask = ((1.0 - valid) * -10000.0)[:, None, None, :]   # [B, 1, 1, S]

    params = {
        "w_qkv": STD * jax.random.normal(keys[1], (H, 3 * H), dtype=jnp.float32),
        "b_qkv": STD * jax.random.normal(keys[2], (3 * H,), dtype=jnp.float32),
        "w_out": STD * jax.random.normal(keys[3], (H, H), dtype=jnp.float32),
        "b_out": STD * jax.random.normal(keys[4], (H,), dtype=jnp.float32),
        "ln_gamma": 1.0 + STD * jax.random.normal(keys[5], (H,), dtype=jnp.float32),
        "ln_beta": STD * jax.random.normal(keys[6], (H,), dtype=jnp.float32),
    }

    ref = _reference(hidden, attn_mask, params, num_heads=NUM_HEADS, eps=EPS)

    # Default perf path: bf16 matmul operands, f32 accumulation/softmax/LayerNorm.
    out_bf16 = bert_attention_tp(hidden, attn_mask, params, num_heads=NUM_HEADS,
                                 layer_norm_eps=EPS, compute_dtype=jnp.bfloat16)
    out_bf16 = jax.block_until_ready(out_bf16)
    assert out_bf16.shape == (B, S, H)
    assert jnp.allclose(out_bf16, ref, atol=2e-3, rtol=2e-3), \
        "bf16 kernel mismatch vs reference"

    # f32 path: strict numerical check of the kernel structure itself
    # (exact softmax reciprocal on this path).
    out_f32 = bert_attention_tp(hidden, attn_mask, params, num_heads=NUM_HEADS,
                                layer_norm_eps=EPS, compute_dtype=jnp.float32)
    out_f32 = jax.block_until_ready(out_f32)
    assert jnp.allclose(out_f32, ref, atol=1e-4, rtol=1e-4), \
        "f32 kernel mismatch vs reference"

    print("KERNEL_OK")
</pallas_src>

<mosaic_0001>
module attributes {stable_mosaic.version = 11 : i64} {
  func.func @_qkv_proj_kernel(%arg0: i32, %arg1: memref<16x32xf32, #tpu.memory_space<vmem>>, %arg2: memref<32x96xbf16, #tpu.memory_space<vmem>>, %arg3: memref<1x96xf32, #tpu.memory_space<vmem>>, %arg4: memref<16x96xbf16, #tpu.memory_space<vmem>>) attributes {dimension_semantics = [#tpu.dimension_semantics<parallel>], iteration_bounds = array<i64: 1>, scalar_prefetch = 0 : i64, scratch_operands = 0 : i64, tpu.core_type = #tpu.core_type<tc>, window_params = [{transform_indices = @transform_0, window_bounds = array<i64: 16, 32>}, {pipeline_mode = #tpu.pipeline_mode<synchronous>, transform_indices = @transform_1, window_bounds = array<i64: 32, 96>}, {pipeline_mode = #tpu.pipeline_mode<synchronous>, transform_indices = @transform_2, window_bounds = array<i64: 1, 96>}, {transform_indices = @transform_3, window_bounds = array<i64: 16, 96>}]} {
    %c0 = arith.constant 0 : index
    %c0_0 = arith.constant 0 : index
    %0 = vector.load %arg1[%c0, %c0_0] : memref<16x32xf32, #tpu.memory_space<vmem>>, vector<16x32xf32>
    %1 = arith.truncf %0 : vector<16x32xf32> to vector<16x32xbf16>
    %c0_1 = arith.constant 0 : index
    %c0_2 = arith.constant 0 : index
    %2 = vector.load %arg2[%c0_1, %c0_2] : memref<32x96xbf16, #tpu.memory_space<vmem>>, vector<32x96xbf16>
    %cst = arith.constant dense<0.000000e+00> : vector<16x96xf32>
    %3 = tpu.matmul %1, %2, %cst {dimension_numbers = #tpu.dot_dimension_numbers<[1], [0], [0], [1], [0, 0, 1, 1], [], []>} : vector<16x32xbf16>, vector<32x96xbf16>, vector<16x96xf32> -> vector<16x96xf32>
    %c0_3 = arith.constant 0 : index
    %c0_4 = arith.constant 0 : index
    %4 = vector.load %arg3[%c0_3, %c0_4] : memref<1x96xf32, #tpu.memory_space<vmem>>, vector<1x96xf32>
    %5 = vector.broadcast %4 : vector<1x96xf32> to vector<16x96xf32>
    %6 = arith.addf %3, %5 : vector<16x96xf32>
    %7 = arith.truncf %6 : vector<16x96xf32> to vector<16x96xbf16>
    %c0_5 = arith.constant 0 : index
    %c0_6 = arith.constant 0 : index
    %8 = vector.load %arg4[%c0_5, %c0_6] : memref<16x96xbf16, #tpu.memory_space<vmem>>, vector<16x96xbf16>
    tpu.vector_store %arg4[%c0_5, %c0_6], %7 {strides = array<i32>} : memref<16x96xbf16, #tpu.memory_space<vmem>>, vector<16x96xbf16>,
    return
  }
  func.func @transform_0(%arg0: i32) -> (i32, i32) {
    %c0_i32 = arith.constant 0 : i32
    %c0_i32_0 = arith.constant 0 : i32
    return %arg0, %c0_i32 : i32, i32
  }
  func.func @transform_1(%arg0: i32) -> (i32, i32) {
    %c0_i32 = arith.constant 0 : i32
    %c0_i32_0 = arith.constant 0 : i32
    %c0_i32_1 = arith.constant 0 : i32
    return %c0_i32, %c0_i32_0 : i32, i32
  }
  func.func @transform_2(%arg0: i32) -> (i32, i32) {
    %c0_i32 = arith.constant 0 : i32
    %c0_i32_0 = arith.constant 0 : i32
    %c0_i32_1 = arith.constant 0 : i32
    return %c0_i32, %c0_i32_0 : i32, i32
  }
  func.func @transform_3(%arg0: i32) -> (i32, i32) {
    %c0_i32 = arith.constant 0 : i32
    %c0_i32_0 = arith.constant 0 : i32
    return %arg0, %c0_i32 : i32, i32
  }
}

</mosaic_0001>

<bundles_post_ra>
// kernel: tpu_custom_call.1
= control target key start
LH: loop header
LB: loop body
LE: loop exit
PB: predicated region body
PF: predicated region fallthrough
CT: control target
= control target key end

     0   :  { %8 = vsyncpa [#allocation3], 0  ;;  %s287_s0 = inlined_call_operand.hbm [shape: f32[16,32], index: 0, kind: input, shape index: {}]   ;;  %s288_s1 = inlined_call_operand.hbm [shape: bf16[32,96], index: 1, kind: input, shape index: {}]   ;;  %s289_s2 = inlined_call_operand.vmem [shape: f32[1,96], index: 2, kind: input, shape index: {}]   ;;  %s290_s3 = inlined_call_operand.hbm [shape: bf16[16,96], index: 3, kind: output, shape index: {}]  }
   0x1   :  { %9 = vsyncpa [#allocation6], 0 }
   0x2   :  { %10 = vsyncpa [#allocation4], 0  ;;  %s240_s12 = smov [#allocation2]  }
   0x3   :  { %s16_s13 = sshll.u32 %s240_s12, 4  ;;  %s17_s13 = int_to_ptr.vmem [resolvable:$true] %s16_s13 }
   0x4   :  { %s182_s14 = scalar_lea.vmem %s17_s13, 256  ;;  %p187_p1 = scmp.lt.s32.totalorder %s17_s13, %s17_s13 }
   0x5   :  { %p183_p0 = scmp.ne.s32.totalorder %s17_s13, %s182_s14  ;;  %p188_p2 = scmp.lt.s32.totalorder %s182_s14, %s182_s14 }
   0x7   :  { %p189_p3 = por %p188_p2, %p187_p1 }
   0x9   :  { %p190_p4 = pnand %p189_p3, %p183_p0 }
   0xb   :  { %193 = shalt.err (!%p190_p4)
}
   0xc   :  { %s241_s15 = smov 128   ;;  %s242_s16 = smov 8  }
   0xd   :  { %22 = dma.hbm_to_vmem [thread:$0]  %s287_s0, 256, %s17_s13, [#allocation3], %s241_s15, %s241_s15, %s242_s16  }
   0xe   :  { %s243_s19 = smov [#allocation5]  }
   0xf   :  { %s28_s20 = sshll.u32 %s243_s19, 4  ;;  %s29_s20 = int_to_ptr.vmem [resolvable:$true] %s28_s20 }
  0x10   :  { %s202_s21 = scalar_lea.vmem %s29_s20, 256  ;;  %p207_p6 = scmp.lt.s32.totalorder %s29_s20, %s29_s20 }
  0x11   :  { %p203_p5 = scmp.ne.s32.totalorder %s29_s20, %s202_s21  ;;  %p208_p7 = scmp.lt.s32.totalorder %s202_s21, %s202_s21 }
  0x13   :  { %p209_p8 = por %p208_p7, %p207_p6 }
  0x15   :  { %p210_p9 = pnand %p209_p8, %p203_p5 }
  0x17   :  { %213 = shalt.err (!%p210_p9)
}
  0x18   :  { %s244_s22 = smov 64   ;;  %s245_s23 = smov 4  }
  0x19   :  { %34 = dma.hbm_to_vmem [thread:$0]  %s288_s1, 256, %s29_s20, [#allocation6], %s244_s22, %s244_s22, %s245_s23  }
  0x1a   :  { %234 = dma.done.wait [#allocation3], 256  }
  0x1b   :  { %235 = vsyncadd [#allocation3], 4294967040 }
  0x1c   :  { %236 = dma.done.wait [#allocation6], 256  }
  0x1d   :  { %237 = vsyncadd [#allocation6], 4294967040  ;;  %v246_v0 = vmov 0.0   ;;  %vm247_vm0 = vmmov 0   ;;  %v172_v1 = vld [vmem:[#allocation5 + $0x8] sm:$0xff]   ;;  %v173_v2 = vld [vmem:[#allocation5] sm:$0xff]  }
  0x1e   :  { %155 = vmatprep.subr.bf16.mxu0 %v246_v0  ;;  %159 = vmatprep.mubr.msk.bf16.mxu0 %vm247_vm0, %v246_v0  ;;  %v44_v3 = vld [vmem:[#allocation2] sm:$0xff]  ;;  %v45_v4 = vld [vmem:[#allocation2 + $0x8] sm:$0xff]  ;;  %vm70_vm1 = vcmask 261120   ;;  %vm123_vm2 = vcmask 781312   ;;  %s248_s26 = smov [#allocation7]  }
  0x1f   :  { %156 = vmatpush3.bf16.msra.mxu0 %v172_v1  ;;  %v46_v5 = vpack.c.bf16 %v45_v4, %v44_v3  ;;  %v144_v6 = vld [vmem:[%s289_s2] ss:$0 sm:$0xff]  ;;  %s131_s27 = sshll.u32 %s248_s26, 4  ;;  %s132_s27 = int_to_ptr.vmem [resolvable:$true] %s131_s27 }
  0x20   :  { %157 = vmatprep.subr.bf16.mxu0 %v246_v0  ;;  %s214_s28 = scalar_lea.vmem %s132_s27, 128  ;;  %p219_p11 = scmp.lt.s32.totalorder %s132_s27, %s132_s27 }
  0x21   :  { %p215_p10 = scmp.ne.s32.totalorder %s132_s27, %s214_s28  ;;  %p220_p12 = scmp.lt.s32.totalorder %s214_s28, %s214_s28 }
  0x23   :  { %158 = vmatpush3.bf16.msra.mxu0 %v173_v2  ;;  %p221_p13 = por %p220_p12, %p219_p11 }
  0x25   :  { %p222_p0 = pnand %p221_p13, %p215_p10 }
  0x26   :  { %160 = vmatmul.mubr.msk.bf16.vlgmr.msra.gmra.mxu0 %vm70_vm1, %v46_v5 }
  0xe6   :  { %v108_v7 = vpop.f32.mrf.mxu0 }
  0xe7   :  { %v109_v8 = vadd.f32 %v144_v6, %v108_v7 }
  0xe8   :  { %v161_v9 = vpop.f32.mrf.mxu0 }
  0xe9   :  { %v150_v10 = vpack.c.bf16 %v109_v8, %v109_v8 }
  0xea   :  { %v111_v11 = vpop.f32.mrf.mxu0 }
  0xeb   :  { %v112_v12 = vadd.f32 %v144_v6, %v111_v11  ;;  %124 = vst.msk [vmem:[#allocation7] sm:$0xf] %vm123_vm2, %v150_v10 }
  0xec   :  { %v162_v13 = vpop.f32.mrf.mxu0 }
  0xed   :  { %v151_v14 = vpack.c.bf16 %v112_v12, %v112_v12 }
  0xef   :  { %125 = vst.msk [vmem:[#allocation7 + $0x4] sm:$0xf] %vm123_vm2, %v151_v14 }
  0xf0   :  { %225 = shalt.err (!%p222_p0)
}
  0xf1   :  { %137 = dma.vmem_to_hbm [thread:$0]  %s132_s27, 128, %s290_s3, [#allocation4], %s244_s22, %s244_s22, %s245_s23  }
  0xf2   :  { %238 = dma.done.wait [#allocation4], 128  }
  0xf3   :  { %239 = vsyncadd [#allocation4], 4294967168 }
  0xf4   :  { %141 = vsyncpa [#allocation3], 1 }
  0xf5   :  { %142 = vsyncpa [#allocation6], 1 }
  0xf6   :  { %143 = vsyncpa [#allocation4], 1 }

</bundles_post_ra>
